<compile_context>
chip_gen: v7x
topology: tpu7x:2x2x1
jax: 0.10.0
libtpu: 0.0.40
codegen_flags: <defaults>
</compile_context>

<pallas_src>
import functools

import jax
import jax.numpy as jnp
from jax.experimental import pallas as pl
from jax.experimental.pallas import tpu as pltpu


# ----------------------------- Pallas kernel ---------------------------------
def _conv_bn_act_kernel(x_ref, w_ref, shift_ref, o_ref, rhs_ref, *,
                        kh, kw, w_pad, m_rows, cin_pad,
                        rebuild_every_tile, apply_act):
    # x_ref:     (1, Cin_pad, L)        zero-padded, flattened input (resident per batch)
    # w_ref:     (tn, KH*KW*Cin_pad)    BN-folded weights, taps folded into K
    # shift_ref: (tn, 1)                f32 BN shift (or conv bias)
    # o_ref:     (1, tn, m_rows)        lane-dense output rows r = h*W_pad + w
    # rhs_ref:   (KH*KW*Cin_pad, m_rows) VMEM scratch: tap-stacked RHS
    def build_rhs():
        for ki in range(kh):              # static tap loop, fully unrolled
            for kj in range(kw):
                t = ki * kw + kj
                off = ki * w_pad + kj
                rhs_ref[t * cin_pad:(t + 1) * cin_pad, :] = x_ref[0, :, off:off + m_rows]

    if rebuild_every_tile:
        build_rhs()
    else:
        # Stacked RHS is carried across the Cout-tile axis (marked "arbitrary");
        # build it only on the first Cout tile of each batch.
        @pl.when(pl.program_id(1) == 0)
        def _():
            build_rhs()

    # Single MXU pass: K = KH*KW*Cin_pad, f32 accumulation.
    acc = jnp.dot(w_ref[...], rhs_ref[...], preferred_element_type=jnp.float32)
    y = acc + shift_ref[...]                              # (tn, m_rows) + (tn, 1)
    if apply_act:
        y = jnp.where(y >= 0.0, y, 0.1 * y)               # LeakyReLU(0.1)
    o_ref[0] = y.astype(o_ref.dtype)


# ------------------------------- wrapper --------------------------------------
def cnn_block_forward(x_nchw, conv_w, bn_gamma=None, bn_beta=None, bn_mean=None,
                      bn_var=None, conv_b=None, *, bn_act=True, stride=1, padding=1,
                      eps=1e-5, compute_dtype=jnp.bfloat16, out_dtype=None):
    """CNNBlock forward. x_nchw: (N, Cin, H, W), conv_w: (Cout, Cin, KH, KW)."""
    N, Cin, H, W = x_nchw.shape
    Cout, _, KH, KW = conv_w.shape
    out_dtype = x_nchw.dtype if out_dtype is None else out_dtype

    H_pad, W_pad = H + 2 * padding, W + 2 * padding
    Ho1, Wo1 = H_pad - KH + 1, W_pad - KW + 1       # stride-1 output extent
    m_rows = Ho1 * W_pad                            # over-computed rows (edge cols dropped)

    # Pad Cin to the sublane packing granule of the compute dtype so the
    # in-kernel tap-stack writes are tile-aligned (zero channels are inert).
    itemsize_c = jnp.dtype(compute_dtype).itemsize
    sub = 8 * (4 // itemsize_c)                     # f32 -> 8, bf16 -> 16
    Cin_pad = ((Cin + sub - 1) // sub) * sub

    # Single pad pass: spatial zero-pad (+1 extra bottom row so the last tap's
    # flattened slice stays in bounds), channel pad, flatten (H, W) -> lane axis.
    xp = jnp.pad(x_nchw, ((0, 0), (0, Cin_pad - Cin),
                          (padding, padding + 1), (padding, padding)))
    L = (H_pad + 1) * W_pad
    x_flat = xp.reshape(N, Cin_pad, L).astype(compute_dtype)

    # Fold eval-mode BN scale into the weights; shift handled in the epilogue.
    if bn_act:
        scale = bn_gamma / jnp.sqrt(bn_var + eps)                       # (Cout,)
        shift = (bn_beta - bn_mean * scale).reshape(Cout, 1).astype(jnp.float32)
        w_eff = conv_w.astype(jnp.float32) * scale[:, None, None, None]
    else:
        shift = (jnp.zeros((Cout,), jnp.float32) if conv_b is None
                 else conv_b.astype(jnp.float32)).reshape(Cout, 1)
        w_eff = conv_w.astype(jnp.float32)
    # (Cout,Cin,KH,KW) -> (Cout,KH,KW,Cin_pad) -> (Cout, KH*KW*Cin_pad);
    # K ordering (tap-major, channel-minor) matches the tap-stacked RHS.
    w_eff = jnp.pad(w_eff, ((0, 0), (0, Cin_pad - Cin), (0, 0), (0, 0)))
    w_fold = jnp.transpose(w_eff, (0, 2, 3, 1)).reshape(Cout, KH * KW * Cin_pad)
    w_fold = w_fold.astype(compute_dtype)
    K = KH * KW * Cin_pad

    # Cout tiling: 128 is enough on every generation once taps are folded into K.
    if Cout > 128 and Cout % 128 == 0:
        tn = 128
    else:
        tn = Cout
    n_ct = Cout // tn

    # Keep both v7x TensorCores fed: with no batch parallelism, make the
    # Cout-tile axis parallel (and rebuild the tap-stacked RHS per tile).
    rebuild_every_tile = (N == 1 and n_ct > 1)
    dim_sem = ("parallel", "parallel") if rebuild_every_tile else ("parallel", "arbitrary")

    itemsize_o = jnp.dtype(out_dtype).itemsize
    live_bytes = (2 * Cin_pad * L * itemsize_c      # input block, double-buffered
                  + 2 * tn * K * itemsize_c         # weight block
                  + 2 * tn * 4                      # shift block
                  + 2 * tn * m_rows * itemsize_o    # output block
                  + K * m_rows * itemsize_c)        # tap-stacked RHS scratch
    vmem_limit = int(min(max(int(live_bytes * 1.5) + (2 << 20), 16 << 20), 64 << 20))
    # TODO(synk): when live_bytes approaches the v7x 64 MiB budget, fall back to
    #             an Ho-row-tiled, double-buffered slab instead of one resident
    #             block per batch (re-reads only the KH-1 halo rows).

    cost = pl.CostEstimate(
        flops=2 * N * Cout * Cin * KH * KW * Ho1 * Wo1,
        transcendentals=0,
        bytes_accessed=(N * Cin_pad * L * itemsize_c
                        + Cout * K * itemsize_c + Cout * 4
                        + N * Cout * m_rows * itemsize_o))

    kernel = functools.partial(_conv_bn_act_kernel,
                               kh=KH, kw=KW, w_pad=W_pad, m_rows=m_rows,
                               cin_pad=Cin_pad,
                               rebuild_every_tile=rebuild_every_tile,
                               apply_act=bn_act)

    out = pl.pallas_call(
        kernel,
        out_shape=jax.ShapeDtypeStruct((N, Cout, m_rows), out_dtype),
        grid_spec=pltpu.PrefetchScalarGridSpec(
            num_scalar_prefetch=0,
            grid=(N, n_ct),
            in_specs=[
                # Whole padded image per batch; index constant across the Cout
                # axis, so it is DMA'd once per batch and stays resident.
                pl.BlockSpec((1, Cin_pad, L), lambda n, c: (n, 0, 0)),
                pl.BlockSpec((tn, K), lambda n, c: (c, 0)),
                pl.BlockSpec((tn, 1), lambda n, c: (c, 0)),
            ],
            out_specs=pl.BlockSpec((1, tn, m_rows), lambda n, c: (n, c, 0)),
            scratch_shapes=[pltpu.VMEM((K, m_rows), compute_dtype)],
        ),
        compiler_params=pltpu.CompilerParams(
            dimension_semantics=dim_sem,
            vmem_limit_bytes=vmem_limit),
        cost_estimate=cost,
    )(x_flat, w_fold, shift)

    # (N, Cout, Ho1*W_pad) -> (N, Cout, Ho1, W_pad); drop the KW-1 over-computed
    # right-edge columns.  Already NCHW, no final transpose.
    out = out.reshape(N, Cout, Ho1, W_pad)[:, :, :, :Wo1]
    if stride > 1:
        # TODO(synk): stride>1 over-computes the stride-1 conv and subsamples; a
        #             dedicated strided path would save ~stride^2 MXU + writeback.
        out = out[:, :, ::stride, ::stride]
    return out


# ------------------------------ reference -------------------------------------
def cnn_block_reference(x_nchw, conv_w, bn_gamma, bn_beta, bn_mean, bn_var,
                        *, stride=1, padding=1, eps=1e-5):
    y = jax.lax.conv_general_dilated(
        x_nchw.astype(jnp.float32), conv_w.astype(jnp.float32),
        window_strides=(stride, stride),
        padding=[(padding, padding), (padding, padding)],
        dimension_numbers=("NCHW", "OIHW", "NCHW"))
    scale = (bn_gamma / jnp.sqrt(bn_var + eps)).reshape(1, -1, 1, 1)
    shift = (bn_beta - bn_mean * (bn_gamma / jnp.sqrt(bn_var + eps))).reshape(1, -1, 1, 1)
    y = y * scale + shift
    return jnp.where(y >= 0.0, y, 0.1 * y)


# --------------------------------- main ----------------------------------------
if __name__ == "__main__":
    # CNNBlock(in_channels=4, out_channels=8, bn_act=True, kernel_size=3, stride=1, padding=1)
    N, Cin, H, W = 2, 4, 16, 16
    Cout, KH, KW = 8, 3, 3

    key = jax.random.PRNGKey(0)
    k_x, k_w, k_g, k_b, k_m, k_v = jax.random.split(key, 6)

    x = jax.random.normal(k_x, (N, Cin, H, W), dtype=jnp.float32)
    conv_w = jax.random.normal(k_w, (Cout, Cin, KH, KW), dtype=jnp.float32) * 0.1
    bn_gamma = jax.random.uniform(k_g, (Cout,), minval=0.5, maxval=1.5, dtype=jnp.float32)
    bn_beta = jax.random.normal(k_b, (Cout,), dtype=jnp.float32) * 0.1
    bn_mean = jax.random.normal(k_m, (Cout,), dtype=jnp.float32) * 0.1
    bn_var = jax.random.uniform(k_v, (Cout,), minval=0.5, maxval=1.5, dtype=jnp.float32)

    fwd = jax.jit(functools.partial(cnn_block_forward, stride=1, padding=1))
    out = fwd(x, conv_w, bn_gamma, bn_beta, bn_mean, bn_var)
    out = jax.block_until_ready(out)

    ref = cnn_block_reference(x, conv_w, bn_gamma, bn_beta, bn_mean, bn_var,
                              stride=1, padding=1)
    assert out.shape == (N, Cout, H, W), out.shape
    # bf16 MXU inputs with f32 accumulation -> loosened tolerance vs f32 reference.
    assert jnp.allclose(out, ref, atol=5e-2, rtol=5e-2), (
        float(jnp.max(jnp.abs(out - ref))))

    print("KERNEL_OK")
</pallas_src>

<mosaic_0001>
module attributes {stable_mosaic.version = 11 : i64} {
  func.func @_conv_bn_act_kernel(%arg0: i32, %arg1: i32, %arg2: memref<1x16x342xbf16, #tpu.memory_space<vmem>>, %arg3: memref<8x144xbf16, #tpu.memory_space<vmem>>, %arg4: memref<8x1xf32, #tpu.memory_space<vmem>>, %arg5: memref<1x8x288xf32, #tpu.memory_space<vmem>>, %arg6: memref<144x288xbf16, #tpu.memory_space<vmem>>) attributes {dimension_semantics = [#tpu.dimension_semantics<parallel>, #tpu.dimension_semantics<arbitrary>], iteration_bounds = array<i64: 2, 1>, scalar_prefetch = 0 : i64, scratch_operands = 1 : i64, tpu.core_type = #tpu.core_type<tc>, window_params = [{transform_indices = @transform_0, window_bounds = array<i64: 1, 16, 342>}, {transform_indices = @transform_1, window_bounds = array<i64: 8, 144>}, {transform_indices = @transform_2, window_bounds = array<i64: 8, 1>}, {transform_indices = @transform_3, window_bounds = array<i64: 1, 8, 288>}]} {
    %c0_i32 = arith.constant 0 : i32
    %0 = arith.cmpi eq, %arg1, %c0_i32 : i32
    %1 = arith.extui %0 : i1 to i32
    %c0_i32_0 = arith.constant 0 : i32
    %2 = arith.cmpi ne, %1, %c0_i32_0 : i32
    scf.if %2 {
      %c0_11 = arith.constant 0 : index
      %c0_12 = arith.constant 0 : index
      %c0_13 = arith.constant 0 : index
      %17 = vector.load %arg2[%c0_11, %c0_12, %c0_13] : memref<1x16x342xbf16, #tpu.memory_space<vmem>>, vector<1x16x288xbf16>
      %18 = vector.shape_cast %17 : vector<1x16x288xbf16> to vector<16x288xbf16>
      %c0_14 = arith.constant 0 : index
      %c0_15 = arith.constant 0 : index
      %19 = vector.load %arg6[%c0_14, %c0_15] : memref<144x288xbf16, #tpu.memory_space<vmem>>, vector<16x288xbf16>
      tpu.vector_store %arg6[%c0_14, %c0_15], %18 {strides = array<i32>} : memref<144x288xbf16, #tpu.memory_space<vmem>>, vector<16x288xbf16>,
      %c0_16 = arith.constant 0 : index
      %c0_17 = arith.constant 0 : index
      %c1 = arith.constant 1 : index
      %20 = vector.load %arg2[%c0_16, %c0_17, %c1] : memref<1x16x342xbf16, #tpu.memory_space<vmem>>, vector<1x16x288xbf16>
      %21 = vector.shape_cast %20 : vector<1x16x288xbf16> to vector<16x288xbf16>
      %c16 = arith.constant 16 : index
      %c0_18 = arith.constant 0 : index
      %22 = vector.load %arg6[%c16, %c0_18] : memref<144x288xbf16, #tpu.memory_space<vmem>>, vector<16x288xbf16>
      tpu.vector_store %arg6[%c16, %c0_18], %21 {strides = array<i32>} : memref<144x288xbf16, #tpu.memory_space<vmem>>, vector<16x288xbf16>,
      %c0_19 = arith.constant 0 : index
      %c0_20 = arith.constant 0 : index
      %c2 = arith.constant 2 : index
      %23 = vector.load %arg2[%c0_19, %c0_20, %c2] : memref<1x16x342xbf16, #tpu.memory_space<vmem>>, vector<1x16x288xbf16>
      %24 = vector.shape_cast %23 : vector<1x16x288xbf16> to vector<16x288xbf16>
      %c32 = arith.constant 32 : index
      %c0_21 = arith.constant 0 : index
      %25 = vector.load %arg6[%c32, %c0_21] : memref<144x288xbf16, #tpu.memory_space<vmem>>, vector<16x288xbf16>
      tpu.vector_store %arg6[%c32, %c0_21], %24 {strides = array<i32>} : memref<144x288xbf16, #tpu.memory_space<vmem>>, vector<16x288xbf16>,
      %c0_22 = arith.constant 0 : index
      %c0_23 = arith.constant 0 : index
      %c18 = arith.constant 18 : index
      %26 = vector.load %arg2[%c0_22, %c0_23, %c18] : memref<1x16x342xbf16, #tpu.memory_space<vmem>>, vector<1x16x288xbf16>
      %27 = vector.shape_cast %26 : vector<1x16x288xbf16> to vector<16x288xbf16>
      %c48 = arith.constant 48 : index
      %c0_24 = arith.constant 0 : index
      %28 = vector.load %arg6[%c48, %c0_24] : memref<144x288xbf16, #tpu.memory_space<vmem>>, vector<16x288xbf16>
      tpu.vector_store %arg6[%c48, %c0_24], %27 {strides = array<i32>} : memref<144x288xbf16, #tpu.memory_space<vmem>>, vector<16x288xbf16>,
      %c0_25 = arith.constant 0 : index
      %c0_26 = arith.constant 0 : index
      %c19 = arith.constant 19 : index
      %29 = vector.load %arg2[%c0_25, %c0_26, %c19] : memref<1x16x342xbf16, #tpu.memory_space<vmem>>, vector<1x16x288xbf16>
      %30 = vector.shape_cast %29 : vector<1x16x288xbf16> to vector<16x288xbf16>
      %c64 = arith.constant 64 : index
      %c0_27 = arith.constant 0 : index
      %31 = vector.load %arg6[%c64, %c0_27] : memref<144x288xbf16, #tpu.memory_space<vmem>>, vector<16x288xbf16>
      tpu.vector_store %arg6[%c64, %c0_27], %30 {strides = array<i32>} : memref<144x288xbf16, #tpu.memory_space<vmem>>, vector<16x288xbf16>,
      %c0_28 = arith.constant 0 : index
      %c0_29 = arith.constant 0 : index
      %c20 = arith.constant 20 : index
      %32 = vector.load %arg2[%c0_28, %c0_29, %c20] : memref<1x16x342xbf16, #tpu.memory_space<vmem>>, vector<1x16x288xbf16>
      %33 = vector.shape_cast %32 : vector<1x16x288xbf16> to vector<16x288xbf16>
      %c80 = arith.constant 80 : index
      %c0_30 = arith.constant 0 : index
      %34 = vector.load %arg6[%c80, %c0_30] : memref<144x288xbf16, #tpu.memory_space<vmem>>, vector<16x288xbf16>
      tpu.vector_store %arg6[%c80, %c0_30], %33 {strides = array<i32>} : memref<144x288xbf16, #tpu.memory_space<vmem>>, vector<16x288xbf16>,
      %c0_31 = arith.constant 0 : index
      %c0_32 = arith.constant 0 : index
      %c36 = arith.constant 36 : index
      %35 = vector.load %arg2[%c0_31, %c0_32, %c36] : memref<1x16x342xbf16, #tpu.memory_space<vmem>>, vector<1x16x288xbf16>
      %36 = vector.shape_cast %35 : vector<1x16x288xbf16> to vector<16x288xbf16>
      %c96 = arith.constant 96 : index
      %c0_33 = arith.constant 0 : index
      %37 = vector.load %arg6[%c96, %c0_33] : memref<144x288xbf16, #tpu.memory_space<vmem>>, vector<16x288xbf16>
      tpu.vector_store %arg6[%c96, %c0_33], %36 {strides = array<i32>} : memref<144x288xbf16, #tpu.memory_space<vmem>>, vector<16x288xbf16>,
      %c0_34 = arith.constant 0 : index
      %c0_35 = arith.constant 0 : index
      %c37 = arith.constant 37 : index
      %38 = vector.load %arg2[%c0_34, %c0_35, %c37] : memref<1x16x342xbf16, #tpu.memory_space<vmem>>, vector<1x16x288xbf16>
      %39 = vector.shape_cast %38 : vector<1x16x288xbf16> to vector<16x288xbf16>
      %c112 = arith.constant 112 : index
      %c0_36 = arith.constant 0 : index
      %40 = vector.load %arg6[%c112, %c0_36] : memref<144x288xbf16, #tpu.memory_space<vmem>>, vector<16x288xbf16>
      tpu.vector_store %arg6[%c112, %c0_36], %39 {strides = array<i32>} : memref<144x288xbf16, #tpu.memory_space<vmem>>, vector<16x288xbf16>,
      %c0_37 = arith.constant 0 : index
      %c0_38 = arith.constant 0 : index
      %c38 = arith.constant 38 : index
      %41 = vector.load %arg2[%c0_37, %c0_38, %c38] : memref<1x16x342xbf16, #tpu.memory_space<vmem>>, vector<1x16x288xbf16>
      %42 = vector.shape_cast %41 : vector<1x16x288xbf16> to vector<16x288xbf16>
      %c128 = arith.constant 128 : index
      %c0_39 = arith.constant 0 : index
      %43 = vector.load %arg6[%c128, %c0_39] : memref<144x288xbf16, #tpu.memory_space<vmem>>, vector<16x288xbf16>
      tpu.vector_store %arg6[%c128, %c0_39], %42 {strides = array<i32>} : memref<144x288xbf16, #tpu.memory_space<vmem>>, vector<16x288xbf16>,
    } else {
    }
    %c0 = arith.constant 0 : index
    %c0_1 = arith.constant 0 : index
    %3 = vector.load %arg3[%c0, %c0_1] : memref<8x144xbf16, #tpu.memory_space<vmem>>, vector<8x144xbf16>
    %c0_2 = arith.constant 0 : index
    %c0_3 = arith.constant 0 : index
    %4 = vector.load %arg6[%c0_2, %c0_3] : memref<144x288xbf16, #tpu.memory_space<vmem>>, vector<144x288xbf16>
    %cst = arith.constant dense<0.000000e+00> : vector<8x288xf32>
    %5 = tpu.matmul %3, %4, %cst {dimension_numbers = #tpu.dot_dimension_numbers<[1], [0], [0], [1], [0, 0, 1, 1], [], []>} : vector<8x144xbf16>, vector<144x288xbf16>, vector<8x288xf32> -> vector<8x288xf32>
    %c0_4 = arith.constant 0 : index
    %c0_5 = arith.constant 0 : index
    %6 = vector.load %arg4[%c0_4, %c0_5] : memref<8x1xf32, #tpu.memory_space<vmem>>, vector<8x1xf32>
    %7 = vector.broadcast %6 : vector<8x1xf32> to vector<8x288xf32>
    %8 = arith.addf %5, %7 : vector<8x288xf32>
    %cst_6 = arith.constant 0.000000e+00 : f32
    %9 = vector.broadcast %cst_6 : f32 to vector<8x288xf32>
    %10 = arith.cmpf oge, %8, %9 : vector<8x288xf32>
    %cst_7 = arith.constant 1.000000e-01 : f32
    %11 = vector.broadcast %cst_7 : f32 to vector<8x288xf32>
    %12 = arith.mulf %11, %8 : vector<8x288xf32>
    %13 = arith.select %10, %8, %12 : vector<8x288xi1>, vector<8x288xf32>
    %c0_8 = arith.constant 0 : index
    %c0_9 = arith.constant 0 : index
    %c0_10 = arith.constant 0 : index
    %14 = vector.load %arg5[%c0_8, %c0_9, %c0_10] : memref<1x8x288xf32, #tpu.memory_space<vmem>>, vector<1x8x288xf32>
    %15 = vector.shape_cast %14 : vector<1x8x288xf32> to vector<8x288xf32>
    %16 = vector.shape_cast %13 : vector<8x288xf32> to vector<1x8x288xf32>
    tpu.vector_store %arg5[%c0_8, %c0_9, %c0_10], %16 {strides = array<i32>} : memref<1x8x288xf32, #tpu.memory_space<vmem>>, vector<1x8x288xf32>,
    return
  }
  func.func @transform_0(%arg0: i32, %arg1: i32) -> (i32, i32, i32) {
    %c0_i32 = arith.constant 0 : i32
    %c0_i32_0 = arith.constant 0 : i32
    %c0_i32_1 = arith.constant 0 : i32
    return %arg0, %c0_i32, %c0_i32_0 : i32, i32, i32
  }
  func.func @transform_1(%arg0: i32, %arg1: i32) -> (i32, i32) {
    %c0_i32 = arith.constant 0 : i32
    %c0_i32_0 = arith.constant 0 : i32
    return %arg1, %c0_i32 : i32, i32
  }
  func.func @transform_2(%arg0: i32, %arg1: i32) -> (i32, i32) {
    %c0_i32 = arith.constant 0 : i32
    %c0_i32_0 = arith.constant 0 : i32
    return %arg1, %c0_i32 : i32, i32
  }
  func.func @transform_3(%arg0: i32, %arg1: i32) -> (i32, i32, i32) {
    %c0_i32 = arith.constant 0 : i32
    %c0_i32_0 = arith.constant 0 : i32
    return %arg0, %arg1, %c0_i32 : i32, i32, i32
  }
}

</mosaic_0001>

<bundles_post_ra>
// kernel: cnn_block_forward.1
= control target key start
LH: loop header
LB: loop body
LE: loop exit
PB: predicated region body
PF: predicated region fallthrough
CT: control target
= control target key end

     0   :  { %s911_s12 = smov 0   ;;  %s913_s13 = smov 0   ;;  %s996_s0 = inlined_call_operand.vmem [shape: bf16[2,16,342], index: 0, kind: input, shape index: {}]   ;;  %s997_s1 = inlined_call_operand.vmem [shape: bf16[8,144], index: 1, kind: input, shape index: {}]   ;;  %s998_s2 = inlined_call_operand.vmem [shape: f32[8,1], index: 2, kind: input, shape index: {}]   ;;  %s999_s3 = inlined_call_operand.vmem [shape: f32[2,8,288], index: 3, kind: output, shape index: {}]  }
   0x1   :  { %s915_s14 = smov 0  }
   0x2 LB: > { %s25_s15 = sadd.s32 1, %s876_s13  ;;  %p773_p0 = scmp.ge.s32.totalorder %s880_s14, 1  ;;  %s880_s14 = sphi %s915_s14, %s13_s14   ;;  %s876_s13 = sphi %s913_s13, %s1001_s13   ;;  %s872_s12 = sphi %s911_s12, %s1000_s12  }
   0x3   : > { %p27_p1 = scmp.ge.s32.totalorder %s25_s15, 2  ;;  %p170_p2 = scmp.lt.s32.totalorder %s880_s14, 3 }
   0x5   : > { %s1003_s15 = smov (%p27_p1, %s25_s15), 0  ;;  %p171_p3 = pnand %p773_p0, %p170_p2 }
   0x6   : > { %p207_p4 = scmp.lt.s32.totalorder (!%p171_p3), %s872_s12, 1  ;;  %v882_v0 = vmov (!%p171_p3), 0   ;;  %s883_s20 = smov (!%p171_p3), 127   ;;  %vm257_vm0 = vcmask (!%p171_p3), 261120   ;;  %v956_v12 = vld [vmem:[%s997_s1] sm:$0xff] (!%p171_p3)  ;;  %vm555_vm1 = vcmask (!%p171_p3), 130048  }
   0x7   : > { %174 = sbr.rel (%p171_p3) target bundleno = 407 (0x197), region = 32  ;;  %600 = vmatprep.subr.bf16.mxu1 (!%p171_p3), %v882_v0  ;;  %843 = vset.pattern.permute.xlu0 (!%p171_p3), %v882_v0  ;;  %s884_s21 = smov (!%p171_p3), 126   ;;  %v804_v13 = vcombine.high (!%p171_p3), %v956_v12, %v956_v12  ;;  %v543_v15 = vld [vmem:[%s998_s2] sm:$0xff] (!%p171_p3)  ;;  %vm282_vm2 = vcmask (!%p171_p3), 1039360   ;;  %vm314_vm3 = vcmask (!%p171_p3), 1031168   ;;  %vm346_vm4 = vcmask (!%p171_p3), 900096  }
   0x8   : > { %s885_s22 = smov (!%p171_p3), 110   ;;  %s886_s23 = smov (!%p171_p3), 109   ;;  %vm378_vm5 = vcmask (!%p171_p3), 891904   ;;  %vm410_vm6 = vcmask (!%p171_p3), 883712   ;;  %vm442_vm7 = vcmask (!%p171_p3), 752640   ;;  %vm474_vm8 = vcmask (!%p171_p3), 744448  }
   0x9   : > { %s887_s24 = smov (!%p171_p3), 108   ;;  %s888_s25 = smov (!%p171_p3), 92   ;;  %806 = vmatprep.mubr.msk.bf16.mxu1 (!%p171_p3), %vm555_vm1, %v804_v13  ;;  %805 = vmatprep.mubr.msk.bf16.mxu0 (!%p171_p3), %vm555_vm1, %v804_v13  ;;  %vm506_vm9 = vcmask (!%p171_p3), 736256   ;;  %v803_v63 = vcombine.low (!%p171_p3), %v956_v12, %v956_v12 }
   0xa   : > { %s889_s28 = smov (!%p171_p3), 91   ;;  %s890_s29 = smov (!%p171_p3), 90  }
   0xe   : > { %s1005_s12 = smov (!%p207_p4, %s872_s12), 1 }
   0xf   : > { %s809_s16 = smul.u32 24, %s1005_s12 }
  0x11   : > { %s939_s19 = scalar_lea.vmem %s996_s0, %s809_s16  ;;  %s229_s7 = scalar_lea.vmem %s999_s3, %s809_s16 }
  0x12   : > { %v844_v1 = vld [vmem:[%s939_s19 + $0x4] ss:$12 sps:$4 sm:$0xff]   ;;  %v846_v2 = vld [vmem:[%s939_s19] ss:$12 sps:$4 sm:$0xff]   ;;  %v847_v3 = vld [vmem:[%s939_s19 + $0x8] ss:$12 sps:$4 sm:$0xff]  }
  0x13   : > { %278 = vrot.lane.b32.xlu0 %v844_v1, %s883_s20  ;;  %559 = vmatprep.subr.bf16.mxu0 %v844_v1  ;;  %v848_v4 = vld [vmem:[%s939_s19 + $0x8] ss:$12 sps:$4 sm:$0xff]  }
  0x14   : > { %276 = vrot.lane.b32.xlu1 %v846_v2, %s883_s20  ;;  %560 = vmatpush1.bf16.msra.mxu0 %v846_v2  ;;  %v855_v5 = vld [vmem:[%s939_s19 + $0x8] ss:$12 sps:$4 sm:$0xff]  }
  0x15   : > { %v849_v6 = vld [vmem:[%s939_s19 + $0x8] ss:$12 sps:$4 sm:$0xff]   ;;  %258 = vst.msk [vmem:[#allocation2 + $0x10] sm:$0xff] %vm257_vm0, %v855_v5 }
  0x16   : > { %v850_v7 = vld [vmem:[%s939_s19 + $0x8] ss:$12 sps:$4 sm:$0xff]  }
  0x17   : > { %280 = vrot.lane.b32.xlu0 %v847_v3, %s883_s20  ;;  %v851_v9 = vld [vmem:[%s939_s19 + $0x8] ss:$12 sps:$4 sm:$0xff]  }
  0x18   : > { %310 = vrot.lane.b32.xlu1 %v844_v1, %s884_s21  ;;  %v852_v10 = vld [vmem:[%s939_s19 + $0x8] ss:$12 sps:$4 sm:$0xff]  }
  0x19   : > { %v853_v11 = vld [vmem:[%s939_s19 + $0x8] ss:$12 sps:$4 sm:$0xff]  }
  0x1a   : > { %v854_v14 = vld [vmem:[%s939_s19 + $0x8] ss:$12 sps:$4 sm:$0xff]  }
  0x1b   : > { %312 = vrot.lane.b32.xlu0 %v848_v4, %s884_s21 }
  0x1c   : > { %308 = vrot.lane.b32.xlu1 %v846_v2, %s884_s21  ;;  %v518_v8 = vld [vmem:[#allocation2 + $0x10] sm:$0xff] }
  0x1d   : > { %601 = vmatpush1.bf16.msra.mxu1 %v518_v8 }
  0x1e   : > { %602 = vmatprep.subr.bf16.mxu1 %v882_v0 }
  0x1f   : > { %342 = vrot.lane.b32.xlu0 %v844_v1, %s885_s22 }
  0x20   : > { %344 = vrot.lane.b32.xlu1 %v849_v6, %s885_s22 }
  0x23   : > { %340 = vrot.lane.b32.xlu0 %v846_v2, %s885_s22 }
  0x24   : > { %374 = vrot.lane.b32.xlu1 %v844_v1, %s886_s23 }
  0x27   : > { %376 = vrot.lane.b32.xlu0 %v850_v7, %s886_s23 }
  0x28   : > { %372 = vrot.lane.b32.xlu1 %v846_v2, %s886_s23 }
  0x2b   : > { %406 = vrot.lane.b32.xlu0 %v844_v1, %s887_s24 }
  0x2c   : > { %408 = vrot.lane.b32.xlu1 %v851_v9, %s887_s24 }
  0x2f   : > { %404 = vrot.lane.b32.xlu0 %v846_v2, %s887_s24 }
  0x30   : > { %438 = vrot.lane.b32.xlu1 %v844_v1, %s888_s25 }
  0x33   : > { %440 = vrot.lane.b32.xlu0 %v852_v10, %s888_s25 }
  0x34   : > { %436 = vrot.lane.b32.xlu1 %v846_v2, %s888_s25 }
  0x37   : > { %470 = vrot.lane.b32.xlu0 %v844_v1, %s889_s28 }
  0x38   : > { %472 = vrot.lane.b32.xlu1 %v853_v11, %s889_s28 }
  0x3b   : > { %468 = vrot.lane.b32.xlu0 %v846_v2, %s889_s28 }
  0x3c   : > { %502 = vrot.lane.b32.xlu1 %v844_v1, %s890_s29 }
  0x3f   : > { %504 = vrot.lane.b32.xlu0 %v854_v14, %s890_s29 }
  0x40   : > { %500 = vrot.lane.b32.xlu1 %v846_v2, %s890_s29 }
  0x43   : > { %546 = vperm.xlu0 %843, %v543_v15  }
  0x85   : > { %v279_v16 = vpop.permute.xlu0 %278 }
  0x86   : > { %v277_v17 = vpop.permute.xlu1 %276 }
  0x87   : > { %v283_v18 = vsel %vm282_vm2, %v277_v17, %v279_v16 }
  0x89   : > { %v281_v19 = vpop.permute.xlu0 %280 }
  0x8a   : > { %v284_v20 = vsel %vm282_vm2, %v279_v16, %v281_v19  ;;  %290 = vst.msk [vmem:[#allocation2 + $0x28] sm:$0xff] %vm257_vm0, %v281_v19  ;;  %v311_v21 = vpop.permute.xlu1 %310 }
  0x8b   : > { %561 = vmatprep.subr.bf16.mxu0 %v284_v20 }
  0x8c   : > { %562 = vmatpush1.bf16.msra.mxu0 %v283_v18 }
  0x8d   : > { %v313_v22 = vpop.permute.xlu0 %312 }
  0x8e   : > { %v316_v23 = vsel %vm314_vm3, %v311_v21, %v313_v22  ;;  %322 = vst.msk [vmem:[#allocation2 + $0x40] sm:$0xff] %vm257_vm0, %v313_v22  ;;  %v309_v24 = vpop.permute.xlu1 %308 }
  0x8f   : > { %v315_v25 = vsel %vm314_vm3, %v309_v24, %v311_v21  ;;  %563 = vmatprep.subr.bf16.mxu0 %v316_v23 }
  0x90   : > { %564 = vmatpush1.bf16.msra.mxu0 %v315_v25 }
  0x91   : > { %v343_v26 = vpop.permute.xlu0 %342  ;;  %v521_v27 = vld [vmem:[#allocation2 + $0x28] sm:$0xff] }
  0x92   : > { %v345_v28 = vpop.permute.xlu1 %344  ;;  %603 = vmatpush1.bf16.msra.mxu1 %v521_v27 }
  0x93   : > { %v348_v29 = vsel %vm346_vm4, %v343_v26, %v345_v28  ;;  %354 = vst.msk [vmem:[#allocation2 + $0x58] sm:$0xff] %vm257_vm0, %v345_v28  ;;  %604 = vmatprep.subr.bf16.mxu1 %v882_v0 }
  0x94   : > { %565 = vmatprep.subr.bf16.mxu0 %v348_v29 }
  0x95   : > { %v341_v30 = vpop.permute.xlu0 %340  ;;  %v524_v31 = vld [vmem:[#allocation2 + $0x40] sm:$0xff] }
  0x96   : > { %v347_v32 = vsel %vm346_vm4, %v341_v30, %v343_v26  ;;  %v375_v33 = vpop.permute.xlu1 %374  ;;  %605 = vmatpush1.bf16.msra.mxu1 %v524_v31 }
  0x97   : > { %606 = vmatprep.subr.bf16.mxu1 %v882_v0  ;;  %566 = vmatpush1.bf16.msra.mxu0 %v347_v32 }
  0x99   : > { %v377_v34 = vpop.permute.xlu0 %376 }
  0x9a   : > { %v380_v35 = vsel %vm378_vm5, %v375_v33, %v377_v34  ;;  %386 = vst.msk [vmem:[#allocation2 + $0x70] sm:$0xff] %vm257_vm0, %v377_v34  ;;  %v373_v36 = vpop.permute.xlu1 %372  ;;  %v527_v37 = vld [vmem:[#allocation2 + $0x58] sm:$0xff] }
  0x9b   : > { %v379_v38 = vsel %vm378_vm5, %v373_v36, %v375_v33  ;;  %607 = vmatpush1.bf16.msra.mxu1 %v527_v37  ;;  %567 = vmatprep.subr.bf16.mxu0 %v380_v35 }
  0x9c   : > { %608 = vmatprep.subr.bf16.mxu1 %v882_v0  ;;  %568 = vmatpush1.bf16.msra.mxu0 %v379_v38 }
  0x9d   : > { %v407_v39 = vpop.permute.xlu0 %406 }
  0x9e   : > { %v409_v40 = vpop.permute.xlu1 %408 }
  0x9f   : > { %v412_v41 = vsel %vm410_vm6, %v407_v39, %v409_v40  ;;  %418 = vst.msk [vmem:[#allocation2 + $0x88] sm:$0xff] %vm257_vm0, %v409_v40 }
  0xa0   : > { %569 = vmatprep.subr.bf16.mxu0 %v412_v41 }
  0xa1   : > { %v405_v42 = vpop.permute.xlu0 %404  ;;  %v530_v43 = vld [vmem:[#allocation2 + $0x70] sm:$0xff] }
  0xa2   : > { %v411_v44 = vsel %vm410_vm6, %v405_v42, %v407_v39  ;;  %v439_v45 = vpop.permute.xlu1 %438  ;;  %609 = vmatpush1.bf16.msra.mxu1 %v530_v43 }
  0xa3   : > { %610 = vmatprep.subr.bf16.mxu1 %v882_v0  ;;  %570 = vmatpush1.bf16.msra.mxu0 %v411_v44 }
  0xa5   : > { %v441_v46 = vpop.permute.xlu0 %440 }
  0xa6   : > { %v444_v47 = vsel %vm442_vm7, %v439_v45, %v441_v46  ;;  %450 = vst.msk [vmem:[#allocation2 + $0xa0] sm:$0xff] %vm257_vm0, %v441_v46  ;;  %v437_v48 = vpop.permute.xlu1 %436  ;;  %v533_v49 = vld [vmem:[#allocation2 + $0x88] sm:$0xff] }
  0xa7   : > { %v443_v50 = vsel %vm442_vm7, %v437_v48, %v439_v45  ;;  %611 = vmatpush1.bf16.msra.mxu1 %v533_v49  ;;  %571 = vmatprep.subr.bf16.mxu0 %v444_v47 }
  0xa8   : > { %612 = vmatprep.subr.bf16.mxu1 %v882_v0  ;;  %572 = vmatpush1.bf16.msra.mxu0 %v443_v50 }
  0xa9   : > { %v471_v51 = vpop.permute.xlu0 %470 }
  0xaa   : > { %v473_v52 = vpop.permute.xlu1 %472 }
  0xab   : > { %v476_v53 = vsel %vm474_vm8, %v471_v51, %v473_v52  ;;  %482 = vst.msk [vmem:[#allocation2 + $0xb8] sm:$0xff] %vm257_vm0, %v473_v52 }
  0xac   : > { %573 = vmatprep.subr.bf16.mxu0 %v476_v53 }
  0xad   : > { %v469_v54 = vpop.permute.xlu0 %468  ;;  %v536_v55 = vld [vmem:[#allocation2 + $0xa0] sm:$0xff] }
  0xae   : > { %v475_v56 = vsel %vm474_vm8, %v469_v54, %v471_v51  ;;  %v503_v57 = vpop.permute.xlu1 %502  ;;  %613 = vmatpush1.bf16.msra.mxu1 %v536_v55 }
  0xaf   : > { %614 = vmatprep.subr.bf16.mxu1 %v882_v0  ;;  %574 = vmatpush1.bf16.msra.mxu0 %v475_v56 }
  0xb1   : > { %v505_v58 = vpop.permute.xlu0 %504 }
  0xb2   : > { %v508_v59 = vsel %vm506_vm9, %v503_v57, %v505_v58  ;;  %514 = vst.msk [vmem:[#allocation2 + $0xd0] sm:$0xff] %vm257_vm0, %v505_v58  ;;  %v501_v60 = vpop.permute.xlu1 %500  ;;  %v539_v61 = vld [vmem:[#allocation2 + $0xb8] sm:$0xff] }
  0xb3   : > { %v507_v62 = vsel %vm506_vm9, %v501_v60, %v503_v57  ;;  %615 = vmatpush1.bf16.msra.mxu1 %v539_v61  ;;  %575 = vmatprep.subr.bf16.mxu0 %v508_v59 }
  0xb4   : > { %616 = vmatprep.subr.bf16.mxu1 %v882_v0  ;;  %576 = vmatpush1.bf16.msra.mxu0 %v507_v62 }
  0xb7   : > { %592 = vmatmul.mubr.bf16.vlgmr.msra.gmra.mrb[0].mxu0 %v803_v63 }
  0xb9   : > { %v542_v1 = vld [vmem:[#allocation2 + $0xd0] sm:$0xff] }
  0xba   : > { %617 = vmatpush1.bf16.msra.mxu1 %v542_v1 }
  0xbd   : > { %633 = vmatmul.mubr.bf16.vlgmr.msra.gmra.mrb[0].mxu1 %v803_v63 }
  0xc2   : > { %v547_v2 = vpop.permute.xlu0 %546 }
 0x18a   : > { %v593_v3 = vpop.f32.mrb[0].mxu0 }
 0x18b   : > { %v594_v4 = vadd.f32 %v593_v3, %v547_v2  ;;  %v595_v5 = vpop.f32.mrb[1].mxu0 }
 0x18c   : > { %v596_v6 = vadd.f32 %v595_v5, %v547_v2  ;;  %v597_v7 = vpop.f32.mrb[2].mxu0 }
 0x18d   : > { %vm640_vm10 = vcmp.ge.f32.partialorder %v594_v4, 0.0  ;;  %v643_v8 = vmul.f32 0.1, %v594_v4  ;;  %v598_v9 = vpop.f32.mrb[3].mxu0 }
 0x18e   : > { %vm641_vm11 = vcmp.ge.f32.partialorder %v596_v6, 0.0  ;;  %v644_v0 = vmul.f32 0.1, %v596_v6 }
 0x18f   : > { %v646_v10 = vsel %vm640_vm10, %v594_v4, %v643_v8 }
 0x190   : > { %v634_v11 = vpop.f32.mrb[0].mxu1  ;;  %649 = vst [vmem:[%s229_s7] sm:$0xff] %v646_v10  ;;  %v647_v12 = vsel %vm641_vm11, %v596_v6, %v644_v0 }
 0x191   : > { %v635_v13 = vadd.f32 %v634_v11, %v547_v2  ;;  %v636_v14 = vpop.f32.mrb[1].mxu1  ;;  %650 = vst [vmem:[%s229_s7 + $0x8] sm:$0xff] %v647_v12 }
 0x192   : > { %v637_v15 = vpop.f32.mrb[2].mxu1 }
 0x193   : > { %vm642_vm12 = vcmp.ge.f32.partialorder %v635_v13, 0.0  ;;  %v645_v16 = vmul.f32 0.1, %v635_v13  ;;  %v638_v17 = vpop.f32.mrb[3].mxu1 }
 0x195   : > { %v648_v18 = vsel %vm642_vm12, %v635_v13, %v645_v16 }
 0x196   : > { %652 = vst.msk [vmem:[%s229_s7 + $0x10] sm:$0xff] %vm257_vm0, %v648_v18 }
 0x197 PF: > { %s13_s14 = sadd.s32 1, %s880_s14   ;;  %s1000_s12 = smov %s876_s13 }
 0x198   : > { %p10_p5 = scmp.ge.s32.totalorder %s13_s14, 4   ;;  %s1001_s13 = smov %s1003_s15 }
 0x19a   :  { %12 = sbr.rel (!%p10_p5) target bundleno = 2 (0x2), region = 72 }

</bundles_post_ra>
